<compile_context>
chip_gen: v7x
topology: tpu7x:2x2x1
jax: 0.10.0
libtpu: 0.0.40
codegen_flags: <defaults>
</compile_context>

<pallas_src>
import jax
import jax.numpy as jnp
from jax.experimental import pallas as pl
from jax.experimental.pallas import tpu as pltpu


def _seq_sum_pool_kernel(x_ref, mask_ref, out_ref):
    # x_ref:    (bt, S, H)  values
    # mask_ref: (bt, S, Hm) float mask (1.0 = keep, 0.0 = masked), Hm in {1, H}
    # out_ref:  (bt, H)
    x = x_ref[...]
    keep = mask_ref[...] != 0.0                      # bool, broadcasts over lanes
    x = jnp.where(keep, x, jnp.zeros_like(x))        # masked_fill(~mask, 0)
    out_ref[...] = jnp.sum(x, axis=1).astype(out_ref.dtype)   # sum over dim=-2


def sequence_sum_pool(x, x_mask, *, max_block_bytes=8 * 1024 * 1024):
    """Masked sum pooling over the sequence dimension.

    x:      (batch, seq, hidden) float array
    x_mask: boolean mask, shape (batch, seq, 1), (batch, seq, hidden) or
            (batch, seq) — broadcast against x exactly like torch.masked_fill.
    returns (batch, hidden)
    """
    # TODO(synk): only the 3-D (batch, seq, hidden) layout used by lightautoml is
    # implemented; arbitrary extra leading dims of the torch module are not.
    assert x.ndim == 3, "expected x of shape (batch, seq, hidden)"
    B, S, H = x.shape

    if x_mask.ndim == x.ndim - 1:
        x_mask = x_mask[..., None]
    assert x_mask.ndim == 3
    Hm = x_mask.shape[-1]
    assert Hm in (1, H), "mask last dim must be 1 or hidden"
    mask_f = jnp.broadcast_to(x_mask, (B, S, Hm)).astype(jnp.float32)

    # --- batch tile: largest multiple of 8 under a conservative VMEM budget ---
    row_bytes = (S * H * x.dtype.itemsize + S * Hm * 4) * 2   # double-buffered
    bt = max_block_bytes // max(row_bytes, 1)
    bt = max(8, min(512, bt))
    bt = min(bt, ((B + 7) // 8) * 8)        # don't pad tiny batches up to bt
    bt = max(8, (bt // 8) * 8)

    padded_B = pl.cdiv(B, bt) * bt
    pad = padded_B - B
    if pad:
        x = jnp.pad(x, ((0, pad), (0, 0), (0, 0)))
        mask_f = jnp.pad(mask_f, ((0, pad), (0, 0), (0, 0)))

    out = pl.pallas_call(
        _seq_sum_pool_kernel,
        out_shape=jax.ShapeDtypeStruct((padded_B, H), x.dtype),
        grid=(padded_B // bt,),
        in_specs=[
            pl.BlockSpec((bt, S, H), lambda i: (i, 0, 0)),
            pl.BlockSpec((bt, S, Hm), lambda i: (i, 0, 0)),
        ],
        out_specs=pl.BlockSpec((bt, H), lambda i: (i, 0)),
        compiler_params=pltpu.CompilerParams(dimension_semantics=("parallel",)),
    )(x, mask_f)

    return out[:B]


if __name__ == "__main__":
    key = jax.random.PRNGKey(0)
    kx, kl = jax.random.split(key)

    B, S, H = 4, 8, 128
    x = jax.random.normal(kx, (B, S, H), dtype=jnp.float32)
    # valid-prefix boolean mask, shape (B, S, 1), like a padded-sequence mask
    lengths = jax.random.randint(kl, (B, 1), 1, S + 1)
    x_mask = (jnp.arange(S)[None, :] < lengths)[..., None]

    y = sequence_sum_pool(x, x_mask)
    y = jax.block_until_ready(y)

    ref = jnp.sum(jnp.where(x_mask, x, 0.0), axis=-2)
    assert y.shape == (B, H)
    assert bool(jnp.all(jnp.isfinite(y)))
    assert bool(jnp.allclose(y, ref, atol=1e-5, rtol=1e-5))
    print("KERNEL_OK")
</pallas_src>

<mosaic_0001>
module attributes {stable_mosaic.version = 11 : i64} {
  func.func @_seq_sum_pool_kernel(%arg0: i32, %arg1: memref<8x8x128xf32, #tpu.memory_space<vmem>>, %arg2: memref<8x8x1xf32, #tpu.memory_space<vmem>>, %arg3: memref<8x128xf32, #tpu.memory_space<vmem>>) attributes {dimension_semantics = [#tpu.dimension_semantics<parallel>], iteration_bounds = array<i64: 1>, scalar_prefetch = 0 : i64, scratch_operands = 0 : i64, tpu.core_type = #tpu.core_type<tc>, window_params = [{transform_indices = @transform_0, window_bounds = array<i64: 8, 8, 128>}, {transform_indices = @transform_1, window_bounds = array<i64: 8, 8, 1>}, {transform_indices = @transform_2, window_bounds = array<i64: 8, 128>}]} {
    %c0 = arith.constant 0 : index
    %c0_0 = arith.constant 0 : index
    %c0_1 = arith.constant 0 : index
    %0 = vector.load %arg1[%c0, %c0_0, %c0_1] : memref<8x8x128xf32, #tpu.memory_space<vmem>>, vector<8x8x128xf32>
    %c0_2 = arith.constant 0 : index
    %c0_3 = arith.constant 0 : index
    %c0_4 = arith.constant 0 : index
    %1 = vector.load %arg2[%c0_2, %c0_3, %c0_4] : memref<8x8x1xf32, #tpu.memory_space<vmem>>, vector<8x8x1xf32>
    %cst = arith.constant 0.000000e+00 : f32
    %2 = vector.broadcast %cst : f32 to vector<8x8x1xf32>
    %3 = arith.cmpf one, %1, %2 : vector<8x8x1xf32>
    %cst_5 = arith.constant 0.000000e+00 : f32
    %4 = vector.broadcast %cst_5 : f32 to vector<8x8x128xf32>
    %5 = vector.shape_cast %3 : vector<8x8x1xi1> to vector<8x8x1xi1>
    %6 = vector.broadcast %5 : vector<8x8x1xi1> to vector<8x8x128xi1>
    %7 = arith.select %6, %0, %4 : vector<8x8x128xi1>, vector<8x8x128xf32>
    %cst_6 = arith.constant dense<0.000000e+00> : vector<8x128xf32>
    %8 = vector.multi_reduction <add>, %7, %cst_6 [1] : vector<8x8x128xf32> to vector<8x128xf32>
    %c0_7 = arith.constant 0 : index
    %c0_8 = arith.constant 0 : index
    %9 = vector.load %arg3[%c0_7, %c0_8] : memref<8x128xf32, #tpu.memory_space<vmem>>, vector<8x128xf32>
    tpu.vector_store %arg3[%c0_7, %c0_8], %8 {strides = array<i32>} : memref<8x128xf32, #tpu.memory_space<vmem>>, vector<8x128xf32>,
    return
  }
  func.func @transform_0(%arg0: i32) -> (i32, i32, i32) {
    %c0_i32 = arith.constant 0 : i32
    %c0_i32_0 = arith.constant 0 : i32
    %c0_i32_1 = arith.constant 0 : i32
    return %arg0, %c0_i32, %c0_i32_0 : i32, i32, i32
  }
  func.func @transform_1(%arg0: i32) -> (i32, i32, i32) {
    %c0_i32 = arith.constant 0 : i32
    %c0_i32_0 = arith.constant 0 : i32
    %c0_i32_1 = arith.constant 0 : i32
    return %arg0, %c0_i32, %c0_i32_0 : i32, i32, i32
  }
  func.func @transform_2(%arg0: i32) -> (i32, i32) {
    %c0_i32 = arith.constant 0 : i32
    %c0_i32_0 = arith.constant 0 : i32
    return %arg0, %c0_i32 : i32, i32
  }
}

</mosaic_0001>

<bundles_post_ra>
// kernel: tpu_custom_call.1
= control target key start
LH: loop header
LB: loop body
LE: loop exit
PB: predicated region body
PF: predicated region fallthrough
CT: control target
= control target key end

     0   :  { %v198_v3 = vmov 0   ;;  %s276_s0 = inlined_call_operand.vmem [shape: f32[8,8,128], index: 0, kind: input, shape index: {}]   ;;  %s277_s1 = inlined_call_operand.vmem [shape: f32[8,8,1], index: 1, kind: input, shape index: {}]   ;;  %s278_s2 = inlined_call_operand.hbm [shape: f32[8,128], index: 2, kind: output, shape index: {}]  }
   0x1   :  { %v22_v0 = vld [vmem:[%s277_s1 + $0x10] sm:$0xff]  ;;  %v20_v1 = vld [vmem:[%s277_s1] sm:$0xff]  ;;  %v23_v2 = vld [vmem:[%s277_s1 + $0x18] sm:$0xff]  ;;  %173 = vset.pattern.permute.xlu1 %v198_v3  ;;  %172 = vset.pattern.permute.xlu0 %v198_v3 }
   0x2   :  { %vm30_vm0 = vcmp.ne.f32.partialorder %v22_v0, 0.0  ;;  %vm28_vm1 = vcmp.ne.f32.partialorder %v20_v1, 0.0  ;;  %vm31_vm2 = vcmp.ne.f32.partialorder %v23_v2, 0.0  ;;  %v21_v4 = vld [vmem:[%s277_s1 + $0x8] sm:$0xff]  ;;  %v24_v8 = vld [vmem:[%s277_s1 + $0x20] sm:$0xff] }
   0x3   :  { %v38_v5 = vsel %vm30_vm0, 1, %v198_v3  ;;  %v36_v6 = vsel %vm28_vm1, 1, %v198_v3  ;;  %vm29_vm3 = vcmp.ne.f32.partialorder %v21_v4, 0.0  ;;  %v25_v7 = vld [vmem:[%s277_s1 + $0x28] sm:$0xff]  ;;  %v39_v9 = vsel %vm31_vm2, 1, %v198_v3 }
   0x4   :  { %51 = vperm.xlu1 %173, %v38_v5   ;;  %45 = vperm.xlu0 %172, %v36_v6   ;;  %v37_v10 = vsel %vm29_vm3, 1, %v198_v3 }
   0x5   :  { %7 = vsyncpa [#allocation3], 0  ;;  %vm33_vm4 = vcmp.ne.f32.partialorder %v25_v7, 0.0  ;;  %vm32_vm5 = vcmp.ne.f32.partialorder %v24_v8, 0.0  ;;  %v27_v11 = vld [vmem:[%s277_s1 + $0x38] sm:$0xff]  ;;  %v26_v12 = vld [vmem:[%s277_s1 + $0x30] sm:$0xff] }
   0x6   :  { %v41_v13 = vsel %vm33_vm4, 1, %v198_v3  ;;  %v40_v14 = vsel %vm32_vm5, 1, %v198_v3  ;;  %vm35_vm6 = vcmp.ne.f32.partialorder %v27_v11, 0.0  ;;  %vm34_vm7 = vcmp.ne.f32.partialorder %v26_v12, 0.0  ;;  %v14_v17 = vld [vmem:[%s276_s0 + $0x10] sm:$0xff]  ;;  %v12_v18 = vld [vmem:[%s276_s0] sm:$0xff] }
   0x7   :  { %v43_v15 = vsel %vm35_vm6, 1, %v198_v3  ;;  %v42_v16 = vsel %vm34_vm7, 1, %v198_v3  ;;  %v15_v25 = vld [vmem:[%s276_s0 + $0x18] sm:$0xff]  ;;  %v13_v26 = vld [vmem:[%s276_s0 + $0x8] sm:$0xff]  ;;  %v16_v43 = vld [vmem:[%s276_s0 + $0x20] sm:$0xff]  ;;  %vm140_vm14 = vcmask 1041409  }
   0x8   :  { %54 = vperm.xlu1 %173, %v39_v9   ;;  %48 = vperm.xlu0 %172, %v37_v10   ;;  %v17_v42 = vld [vmem:[%s276_s0 + $0x28] sm:$0xff]  ;;  %v19_v50 = vld [vmem:[%s276_s0 + $0x38] sm:$0xff]  ;;  %v18_v52 = vld [vmem:[%s276_s0 + $0x30] sm:$0xff]  ;;  %vm142_vm1 = vcmask 1042434   ;;  %vm144_vm2 = vcmask 1043459   ;;  %vm146_vm3 = vcmask 1044484  }
   0x9   :  { %vm148_vm4 = vcmask 1045509   ;;  %vm150_vm5 = vcmask 1046534   ;;  %s199_s0 = smov [#allocation2]   ;;  %vm152_vm6 = vcmask 1047559  }
   0xa   :  { %s162_s12 = sshll.u32 %s199_s0, 4  ;;  %s163_s12 = int_to_ptr.vmem [resolvable:$true] %s162_s12 }
   0xb   :  { %s174_s13 = scalar_lea.vmem %s163_s12, 128  ;;  %p179_p1 = scmp.lt.s32.totalorder %s163_s12, %s163_s12 }
   0xc   :  { %60 = vperm.xlu1 %173, %v41_v13   ;;  %57 = vperm.xlu0 %172, %v40_v14   ;;  %p175_p0 = scmp.ne.s32.totalorder %s163_s12, %s174_s13  ;;  %p180_p2 = scmp.lt.s32.totalorder %s174_s13, %s174_s13 }
   0xe   :  { %p181_p3 = por %p180_p2, %p179_p1 }
  0x10   :  { %66 = vperm.xlu1 %173, %v43_v15   ;;  %63 = vperm.xlu0 %172, %v42_v16   ;;  %p182_p4 = pnand %p181_p3, %p175_p0 }
  0x83   :  { %v52_v19 = vpop.permute.xlu1 %51  ;;  %v46_v20 = vpop.permute.xlu0 %45 }
  0x84   :  { %vm70_vm8 = vcmp.eq.s32.totalorder %v52_v19, 1  ;;  %vm68_vm9 = vcmp.eq.s32.totalorder %v46_v20, 1 }
  0x85   :  { %v78_v21 = vsel %vm70_vm8, %v14_v17, 0.0  ;;  %v76_v22 = vsel %vm68_vm9, %v12_v18, 0.0 }
  0x86   :  { %v96_v23 = vrot.slane %v78_v21, 4  ;;  %v84_v24 = vrot.slane %v76_v22, 4 }
  0x87   :  { %v55_v27 = vpop.permute.xlu1 %54  ;;  %v49_v28 = vpop.permute.xlu0 %48 }
  0x88   :  { %v97_v29 = vadd.f32 %v96_v23, %v78_v21  ;;  %v85_v30 = vadd.f32 %v84_v24, %v76_v22  ;;  %vm71_vm10 = vcmp.eq.s32.totalorder %v55_v27, 1  ;;  %vm69_vm11 = vcmp.eq.s32.totalorder %v49_v28, 1 }
  0x89   :  { %v79_v31 = vsel %vm71_vm10, %v15_v25, 0.0  ;;  %v77_v32 = vsel %vm69_vm11, %v13_v26, 0.0 }
  0x8a   :  { %v98_v33 = vrot.slane %v97_v29, 2  ;;  %v86_v34 = vrot.slane %v85_v30, 2  ;;  %v102_v35 = vrot.slane %v79_v31, 4  ;;  %v90_v36 = vrot.slane %v77_v32, 4 }
  0x8b   :  { %v61_v37 = vpop.permute.xlu1 %60  ;;  %v58_v38 = vpop.permute.xlu0 %57 }
  0x8c   :  { %v87_v39 = vadd.f32 %v86_v34, %v85_v30  ;;  %v103_v40 = vadd.f32 %v102_v35, %v79_v31  ;;  %v91_v41 = vadd.f32 %v90_v36, %v77_v32  ;;  %vm73_vm12 = vcmp.eq.s32.totalorder %v61_v37, 1 }
  0x8d   :  { %vm72_vm13 = vcmp.eq.s32.totalorder %v58_v38, 1  ;;  %v99_v44 = vadd.f32 %v98_v33, %v97_v29  ;;  %v81_v47 = vsel %vm73_vm12, %v17_v42, 0.0 }
  0x8e   :  { %v104_v45 = vrot.slane %v103_v40, 2  ;;  %v92_v46 = vrot.slane %v91_v41, 2  ;;  %v80_v48 = vsel %vm72_vm13, %v16_v43, 0.0  ;;  %v88_v53 = vrot.slane %v87_v39, 1 }
  0x8f   :  { %v67_v49 = vpop.permute.xlu1 %66  ;;  %v64_v51 = vpop.permute.xlu0 %63  ;;  %v114_v56 = vrot.slane %v81_v47, 4  ;;  %v108_v57 = vrot.slane %v80_v48, 4  ;;  %v100_v58 = vrot.slane %v99_v44, 1 }
  0x90   :  { %v105_v54 = vadd.f32 %v104_v45, %v103_v40  ;;  %v93_v55 = vadd.f32 %v92_v46, %v91_v41  ;;  %vm75_vm15 = vcmp.eq.s32.totalorder %v67_v49, 1  ;;  %vm74_vm0 = vcmp.eq.s32.totalorder %v64_v51, 1 }
  0x91   :  { %v83_v60 = vsel %vm75_vm15, %v19_v50, 0.0  ;;  %v82_v61 = vsel %vm74_vm0, %v18_v52, 0.0  ;;  %v115_v62 = vadd.f32 %v114_v56, %v81_v47  ;;  %v109_v63 = vadd.f32 %v108_v57, %v80_v48 }
  0x92   :  { %v94_v59 = vrot.slane %v93_v55, 1  ;;  %v126_v0 = vrot.slane %v83_v60, 4  ;;  %v120_v1 = vrot.slane %v82_v61, 4  ;;  %v89_v2 = vadd.f32 %v88_v53, %v87_v39 }
  0x93   :  { %v106_v3 = vrot.slane %v105_v54, 1  ;;  %v116_v5 = vrot.slane %v115_v62, 2  ;;  %v110_v6 = vrot.slane %v109_v63, 2  ;;  %v101_v9 = vadd.f32 %v100_v58, %v99_v44 }
  0x94   :  { %v95_v4 = vadd.f32 %v94_v59, %v93_v55  ;;  %v127_v7 = vadd.f32 %v126_v0, %v83_v60  ;;  %v121_v8 = vadd.f32 %v120_v1, %v82_v61 }
  0x95   :  { %v117_v11 = vadd.f32 %v116_v5, %v115_v62  ;;  %v111_v12 = vadd.f32 %v110_v6, %v109_v63  ;;  %v107_v15 = vadd.f32 %v106_v3, %v105_v54 }
  0x96   :  { %v141_v10 = vsel %vm140_vm14, %v95_v4, %v89_v2  ;;  %v128_v13 = vrot.slane %v127_v7, 2  ;;  %v122_v14 = vrot.slane %v121_v8, 2 }
  0x97   :  { %v143_v16 = vsel %vm142_vm1, %v101_v9, %v141_v10  ;;  %v118_v17 = vrot.slane %v117_v11, 1  ;;  %v112_v18 = vrot.slane %v111_v12, 1 }
  0x98   :  { %v129_v19 = vadd.f32 %v128_v13, %v127_v7  ;;  %v123_v20 = vadd.f32 %v122_v14, %v121_v8  ;;  %v145_v21 = vsel %vm144_vm2, %v107_v15, %v143_v16 }
  0x99   :  { %v119_v22 = vadd.f32 %v118_v17, %v117_v11  ;;  %v113_v23 = vadd.f32 %v112_v18, %v111_v12 }
  0x9a   :  { %v130_v24 = vrot.slane %v129_v19, 1  ;;  %v124_v25 = vrot.slane %v123_v20, 1 }
  0x9b   :  { %v147_v28 = vsel %vm146_vm3, %v113_v23, %v145_v21 }
  0x9c   :  { %v131_v26 = vadd.f32 %v130_v24, %v129_v19  ;;  %v125_v27 = vadd.f32 %v124_v25, %v123_v20  ;;  %v149_v29 = vsel %vm148_vm4, %v119_v22, %v147_v28 }
  0x9e   :  { %v151_v30 = vsel %vm150_vm5, %v125_v27, %v149_v29 }
  0x9f   :  { %v153_v31 = vsel %vm152_vm6, %v131_v26, %v151_v30 }
  0xa0   :  { %155 = vst [vmem:[#allocation2] sm:$0xff] %v153_v31 }
  0xa1   :  { %185 = shalt.err (!%p182_p4)
}
  0xa2   :  { %s186_s16 = scalar_lea.hbm %s278_s2, 128 }
  0xa3   :  { %p187_p5 = scmp.ne.s32.totalorder %s278_s2, %s186_s16  ;;  %p190_p6 = scmp.lt.u32.totalorder %s186_s16, %s278_s2 }
  0xa5   :  { %p192_p7 = pnand %p190_p6, %p187_p5 }
  0xa7   :  { %195 = shalt.err (!%p192_p7)
}
  0xa8   :  { %165 = dma.vmem_to_hbm [thread:$0]  %s163_s12, 128, %s278_s2, [#allocation3]  }
  0xa9   :  { %196 = dma.done.wait [#allocation3], 128  }
  0xaa   :  { %197 = vsyncadd [#allocation3], 4294967168 }
  0xab   :  { %169 = vsyncpa [#allocation3], 1 }

</bundles_post_ra>
